<compile_context>
chip_gen: v7x
topology: tpu7x:2x2x1
jax: 0.10.0
libtpu: 0.0.40
codegen_flags: <defaults>
</compile_context>

<pallas_src>
import functools

import jax
import jax.numpy as jnp
from jax.experimental import pallas as pl
from jax.experimental.pallas import tpu as pltpu

# ---- module hyperparameters (DilatedCausalConv1d defaults) ----
IN_CHANNELS = 8
OUT_CHANNELS = 16
KERNEL_SIZE = 3
NUM_LAYERS = 4
DILATION_RATE = 2
DIVS = 4
CC = OUT_CHANNELS // DIVS                       # _cc in the PyTorch module
DILATIONS = tuple(DILATION_RATE ** i for i in range(NUM_LAYERS))
BN_EPS = 1e-5

# The gate relu-elision in the kernel relies on the stack ending in ReLU
# (relu(x)*sigmoid(x) == x*sigmoid(x) because x >= 0 after the final ReLU).
assert NUM_LAYERS >= 1, "gate relu-elision requires the ReLU-terminated stack"


# --------------------------------------------------------------------------
# Pallas kernel (channels on sublanes, batch folded into the lane axis)
# --------------------------------------------------------------------------
def _dilated_causal_kernel(seq_len,
                           x_ref,
                           w_r_ref, sc_r_ref, sh_r_ref,
                           w_c_ref, sc_c_ref, sh_c_ref,
                           w_dil_ref, sc_dil_ref, sh_dil_ref,
                           w_out_ref, sc_out_ref, sh_out_ref,
                           o_ref):
    _, bbL = x_ref.shape
    cdt = w_r_ref.dtype                              # matmul-input dtype

    x = x_ref[...]                                   # (C_in, bb*L)

    # init_conv_r (1x1) + init_norm_r  (conv bias + BN folded to scale/shift)
    x_o = (jnp.dot(w_r_ref[...], x, preferred_element_type=jnp.float32)
           * sc_r_ref[...] + sh_r_ref[...])          # (C_out, bb*L) f32
    # init_conv_c (1x1) + init_norm_c
    x_c = (jnp.dot(w_c_ref[...], x, preferred_element_type=jnp.float32)
           * sc_c_ref[...] + sh_c_ref[...])          # (CC, bb*L) f32

    # Hoisted causal masks on the per-batch LOCAL lane index.  Batch segments
    # are folded along the lane axis, so pltpu.roll wraps the previous
    # segment's tail into this segment's head; positions local < shift must
    # be zeroed (causal left zero-padding).
    lane = jax.lax.broadcasted_iota(jnp.int32, (CC, bbL), 1)
    local = lane % seq_len
    shifts = sorted({(KERNEL_SIZE - 1 - t) * d
                     for d in DILATIONS for t in range(KERNEL_SIZE)} - {0})
    masks = {s: local >= s for s in shifts}

    # stack: CausalConv1d -> BatchNorm1d -> ReLU -> Dropout (eval: identity)
    for layer in range(NUM_LAYERS):
        d = DILATIONS[layer]
        acc = None
        for t in range(KERNEL_SIZE):
            shift = (KERNEL_SIZE - 1 - t) * d        # causal left zero-pad
            if shift == 0:
                tap = x_c
            else:
                rolled = pltpu.roll(x_c, shift, axis=1)   # XLU lane rotation
                tap = jnp.where(masks[shift], rolled, 0.0)
            w = w_dil_ref[layer * KERNEL_SIZE + t]   # (CC, CC), static index
            part = jnp.dot(w, tap.astype(cdt),
                           preferred_element_type=jnp.float32)
            acc = part if acc is None else acc + part
        x_c = jnp.maximum(acc * sc_dil_ref[layer] + sh_dil_ref[layer], 0.0)
        # TODO(synk): nn.Dropout is identity here (eval-mode semantics).

    # gate: relu(x) * sigmoid(x); x_c >= 0 after the stack's final ReLU, so
    # relu is the identity (invariant asserted at module scope).
    gate = (x_c * jax.nn.sigmoid(x_c)).astype(cdt)

    # out_conv (1x1) + out_norm
    y = (jnp.dot(w_out_ref[...], gate, preferred_element_type=jnp.float32)
         * sc_out_ref[...] + sh_out_ref[...])        # (C_out, bb*L) f32

    o_ref[...] = jnp.maximum(x_o + y, 0.0).astype(o_ref.dtype)


# --------------------------------------------------------------------------
# Wrapper
# --------------------------------------------------------------------------
def _pick_batch_block(B, L, itemsize, vmem_budget_bytes=8 << 20):
    """Largest divisor bb of B whose (8,128)-legal (C, bb*L) blocks fit a
    conservative per-step VMEM budget (double-buffered in+out blocks plus f32
    intermediates), staying safely under the v7x 32 MiB scoped default.  For
    large B this naturally yields >=2 parallel grid steps (v7x dual-TC)."""
    def cost(bb):
        lanes = bb * L
        io = 2 * (IN_CHANNELS + OUT_CHANNELS) * lanes * itemsize  # dbl-buffered
        interm = 128 * lanes                                      # f32 temps
        return io + interm

    divisors = [d for d in range(1, B + 1) if B % d == 0]
    # (8,128) rule: block last dim must be a multiple of 128 or the full dim.
    valid = [d for d in divisors if d == B or (d * L) % 128 == 0]
    fitting = [d for d in valid if cost(d) <= vmem_budget_bytes]
    return max(fitting) if fitting else min(valid)


def dilated_causal_conv1d(x_ncl, kparams, *, io_dtype=jnp.float32):
    """x_ncl: (B, C_in, L) -> (B, C_out, L).  kparams from prepare_params().

    io_dtype=jnp.bfloat16 halves HBM traffic on every generation (this kernel
    is HBM-bound); accumulation stays f32.  Use f32 when exactness matters.
    """
    B, C_in, L = x_ncl.shape
    assert C_in == IN_CHANNELS

    (w_r, sc_r, sh_r, w_c, sc_c, sh_c,
     w_dil, sc_dil, sh_dil, w_out, sc_out, sh_out) = kparams

    # Fold batch into the lane axis once in the wrapper (layout plumbing):
    # (B, C_in, L) -> (C_in, B*L); batch b occupies lanes [b*L, (b+1)*L).
    x2 = jnp.transpose(x_ncl, (1, 0, 2)).reshape(C_in, B * L).astype(io_dtype)

    itemsize = jnp.dtype(io_dtype).itemsize
    bb = _pick_batch_block(B, L, itemsize)
    nb = B // bb

    def rep(a):   # small parameter arrays replicated to every grid step
        # TODO(synk): mark these pipeline_mode=pl.Buffered(1) (or stage once
        # into scratch) to drop per-step param re-DMA when blocks are sized
        # near the v7x scoped-VMEM limit.
        return pl.BlockSpec(a.shape, lambda i, _n=a.ndim: (0,) * _n)

    # TODO(synk): for long sequences (esp. v7x's 64 MiB VMEM) tile along L
    # with a left halo of (K-1)*sum(DILATIONS) = 30 samples instead of
    # whole-L blocks.
    # TODO(synk): optional fp8 activations at the HBM boundary on v7x (scales
    # fold into the existing per-channel scale/shift epilogue).
    out2 = pl.pallas_call(
        functools.partial(_dilated_causal_kernel, L),
        out_shape=jax.ShapeDtypeStruct((OUT_CHANNELS, B * L), io_dtype),
        grid=(nb,),
        in_specs=[
            pl.BlockSpec((C_in, bb * L), lambda i: (0, i)),
            rep(w_r), rep(sc_r), rep(sh_r),
            rep(w_c), rep(sc_c), rep(sh_c),
            rep(w_dil), rep(sc_dil), rep(sh_dil),
            rep(w_out), rep(sc_out), rep(sh_out),
        ],
        out_specs=pl.BlockSpec((OUT_CHANNELS, bb * L), lambda i: (0, i)),
        compiler_params=pltpu.CompilerParams(
            dimension_semantics=("parallel",)),
    )(x2, w_r, sc_r, sh_r, w_c, sc_c, sh_c,
      w_dil, sc_dil, sh_dil, w_out, sc_out, sh_out)

    # (C_out, B*L) -> (B, C_out, L)
    return jnp.transpose(out2.reshape(OUT_CHANNELS, B, L), (1, 0, 2))


# --------------------------------------------------------------------------
# Parameters: logical (PyTorch-like, BN folded) + kernel-layout preparation
# --------------------------------------------------------------------------
def _fold_bn(bias, gamma, beta, mean, var):
    scale = gamma / jnp.sqrt(var + BN_EPS)
    shift = (bias - mean) * scale + beta
    return scale, shift


def init_params(key):
    keys = iter(jax.random.split(key, 64))

    def nrm(shape, scale=0.2):
        return jax.random.normal(next(keys), shape, jnp.float32) * scale

    def bn(c):
        gamma = 1.0 + 0.1 * jax.random.normal(next(keys), (c,), jnp.float32)
        beta = 0.1 * jax.random.normal(next(keys), (c,), jnp.float32)
        mean = 0.1 * jax.random.normal(next(keys), (c,), jnp.float32)
        var = 0.5 + jnp.abs(jax.random.normal(next(keys), (c,), jnp.float32))
        return gamma, beta, mean, var

    # init_conv_r + init_norm_r
    w_r = nrm((IN_CHANNELS, OUT_CHANNELS))
    sc_r, sh_r = _fold_bn(nrm((OUT_CHANNELS,), 0.1), *bn(OUT_CHANNELS))
    # init_conv_c + init_norm_c
    w_c = nrm((IN_CHANNELS, CC))
    sc_c, sh_c = _fold_bn(nrm((CC,), 0.1), *bn(CC))
    # dilated causal conv stack
    w_dil, sc_dil, sh_dil = [], [], []
    for _ in range(NUM_LAYERS):
        w_dil.append(nrm((KERNEL_SIZE, CC, CC)))
        sc, sh = _fold_bn(nrm((CC,), 0.1), *bn(CC))
        sc_dil.append(sc)
        sh_dil.append(sh)
    w_dil = jnp.stack(w_dil)                     # (NL, K, CC_in, CC_out)
    sc_dil = jnp.stack(sc_dil)                   # (NL, CC)
    sh_dil = jnp.stack(sh_dil)
    # out_conv + out_norm
    w_out = nrm((CC, OUT_CHANNELS))
    sc_out, sh_out = _fold_bn(nrm((OUT_CHANNELS,), 0.1), *bn(OUT_CHANNELS))

    return (w_r, sc_r, sh_r, w_c, sc_c, sh_c,
            w_dil, sc_dil, sh_dil, w_out, sc_out, sh_out)


def prepare_params(params, dtype=jnp.float32):
    """One-time re-layout of weights for the lane-folded kernel:
       - 1x1 conv weights transposed to (C_out, C_in),
       - dilated-layer taps as (NL*K, CC_out, CC_in) for per-tap dots,
       - scale/shift as (C, 1) f32 columns (lane-broadcast)."""
    (w_r, sc_r, sh_r, w_c, sc_c, sh_c,
     w_dil, sc_dil, sh_dil, w_out, sc_out, sh_out) = params

    def col(v):
        return v.reshape(-1, 1).astype(jnp.float32)

    w_dil_k = jnp.transpose(w_dil, (0, 1, 3, 2)).reshape(
        NUM_LAYERS * KERNEL_SIZE, CC, CC)        # (NL*K, CC_out, CC_in)

    return (w_r.T.astype(dtype), col(sc_r), col(sh_r),
            w_c.T.astype(dtype), col(sc_c), col(sh_c),
            w_dil_k.astype(dtype),
            sc_dil.reshape(NUM_LAYERS, CC, 1).astype(jnp.float32),
            sh_dil.reshape(NUM_LAYERS, CC, 1).astype(jnp.float32),
            w_out.T.astype(dtype), col(sc_out), col(sh_out))


# --------------------------------------------------------------------------
# Pure-JAX reference (operates on logical params)
# --------------------------------------------------------------------------
def reference(x_ncl, params):
    (w_r, sc_r, sh_r, w_c, sc_c, sh_c,
     w_dil, sc_dil, sh_dil, w_out, sc_out, sh_out) = params
    x = jnp.transpose(x_ncl, (0, 2, 1)).astype(jnp.float32)   # (B, L, C_in)
    B, L, _ = x.shape
    x_o = x @ w_r * sc_r + sh_r
    x_c = x @ w_c * sc_c + sh_c
    for layer in range(NUM_LAYERS):
        d = DILATIONS[layer]
        acc = jnp.zeros((B, L, CC), jnp.float32)
        for t in range(KERNEL_SIZE):
            shift = (KERNEL_SIZE - 1 - t) * d
            xs = jnp.pad(x_c, ((0, 0), (shift, 0), (0, 0)))[:, :L, :]
            acc = acc + xs @ w_dil[layer, t]
        x_c = jnp.maximum(acc * sc_dil[layer] + sh_dil[layer], 0.0)
    x_c = jnp.maximum(x_c, 0.0) * jax.nn.sigmoid(x_c)
    x_c = x_c @ w_out * sc_out + sh_out
    return jnp.transpose(jnp.maximum(x_o + x_c, 0.0), (0, 2, 1))


if __name__ == "__main__":
    key = jax.random.PRNGKey(0)
    kp, kx = jax.random.split(key)
    params = init_params(kp)

    B, L = 2, 128                                # L multiple of 128 -> lane-dense
    x = jax.random.normal(kx, (B, IN_CHANNELS, L), jnp.float32)  # NCL like PyTorch

    ref = reference(x, params)

    # f32 path, tight check
    out_f32 = jax.block_until_ready(
        dilated_causal_conv1d(x, prepare_params(params, jnp.float32),
                              io_dtype=jnp.float32))
    assert out_f32.shape == (B, OUT_CHANNELS, L), out_f32.shape
    assert jnp.allclose(out_f32, ref, rtol=1e-3, atol=1e-3), \
        "f32 kernel/reference mismatch"

    # bf16 I/O + bf16 MXU inputs with f32 accumulation
    out_bf16 = jax.block_until_ready(
        dilated_causal_conv1d(x, prepare_params(params, jnp.bfloat16),
                              io_dtype=jnp.bfloat16))
    assert out_bf16.shape == (B, OUT_CHANNELS, L), out_bf16.shape
    assert jnp.allclose(out_bf16.astype(jnp.float32), ref, rtol=1e-1, atol=1e-1), \
        "bf16 kernel/reference mismatch"

    print("KERNEL_OK")
</pallas_src>

<mosaic_0001>
module attributes {stable_mosaic.version = 11 : i64} {
  func.func @_dilated_causal_kernel(%arg0: i32, %arg1: memref<8x256xf32, #tpu.memory_space<vmem>>, %arg2: memref<16x8xf32, #tpu.memory_space<vmem>>, %arg3: memref<16x1xf32, #tpu.memory_space<vmem>>, %arg4: memref<16x1xf32, #tpu.memory_space<vmem>>, %arg5: memref<4x8xf32, #tpu.memory_space<vmem>>, %arg6: memref<4x1xf32, #tpu.memory_space<vmem>>, %arg7: memref<4x1xf32, #tpu.memory_space<vmem>>, %arg8: memref<12x4x4xf32, #tpu.memory_space<vmem>>, %arg9: memref<4x4x1xf32, #tpu.memory_space<vmem>>, %arg10: memref<4x4x1xf32, #tpu.memory_space<vmem>>, %arg11: memref<16x4xf32, #tpu.memory_space<vmem>>, %arg12: memref<16x1xf32, #tpu.memory_space<vmem>>, %arg13: memref<16x1xf32, #tpu.memory_space<vmem>>, %arg14: memref<16x256xf32, #tpu.memory_space<vmem>>) attributes {dimension_semantics = [#tpu.dimension_semantics<parallel>], iteration_bounds = array<i64: 1>, scalar_prefetch = 0 : i64, scratch_operands = 0 : i64, tpu.core_type = #tpu.core_type<tc>, window_params = [{transform_indices = @transform_0, window_bounds = array<i64: 8, 256>}, {pipeline_mode = #tpu.pipeline_mode<synchronous>, transform_indices = @transform_1, window_bounds = array<i64: 16, 8>}, {pipeline_mode = #tpu.pipeline_mode<synchronous>, transform_indices = @transform_2, window_bounds = array<i64: 16, 1>}, {pipeline_mode = #tpu.pipeline_mode<synchronous>, transform_indices = @transform_3, window_bounds = array<i64: 16, 1>}, {pipeline_mode = #tpu.pipeline_mode<synchronous>, transform_indices = @transform_4, window_bounds = array<i64: 4, 8>}, {pipeline_mode = #tpu.pipeline_mode<synchronous>, transform_indices = @transform_5, window_bounds = array<i64: 4, 1>}, {pipeline_mode = #tpu.pipeline_mode<synchronous>, transform_indices = @transform_6, window_bounds = array<i64: 4, 1>}, {pipeline_mode = #tpu.pipeline_mode<synchronous>, transform_indices = @transform_7, window_bounds = array<i64: 12, 4, 4>}, {pipeline_mode = #tpu.pipeline_mode<synchronous>, transform_indices = @transform_8, window_bounds = array<i64: 4, 4, 1>}, {pipeline_mode = #tpu.pipeline_mode<synchronous>, transform_indices = @transform_9, window_bounds = array<i64: 4, 4, 1>}, {pipeline_mode = #tpu.pipeline_mode<synchronous>, transform_indices = @transform_10, window_bounds = array<i64: 16, 4>}, {pipeline_mode = #tpu.pipeline_mode<synchronous>, transform_indices = @transform_11, window_bounds = array<i64: 16, 1>}, {pipeline_mode = #tpu.pipeline_mode<synchronous>, transform_indices = @transform_12, window_bounds = array<i64: 16, 1>}, {transform_indices = @transform_13, window_bounds = array<i64: 16, 256>}]} {
    %c0 = arith.constant 0 : index
    %c0_0 = arith.constant 0 : index
    %0 = vector.load %arg1[%c0, %c0_0] : memref<8x256xf32, #tpu.memory_space<vmem>>, vector<8x256xf32>
    %c0_1 = arith.constant 0 : index
    %c0_2 = arith.constant 0 : index
    %1 = vector.load %arg2[%c0_1, %c0_2] : memref<16x8xf32, #tpu.memory_space<vmem>>, vector<16x8xf32>
    %cst = arith.constant dense<0.000000e+00> : vector<16x256xf32>
    %2 = tpu.matmul %1, %0, %cst {dimension_numbers = #tpu.dot_dimension_numbers<[1], [0], [0], [1], [0, 0, 1, 1], [], []>} : vector<16x8xf32>, vector<8x256xf32>, vector<16x256xf32> -> vector<16x256xf32>
    %c0_3 = arith.constant 0 : index
    %c0_4 = arith.constant 0 : index
    %3 = vector.load %arg3[%c0_3, %c0_4] : memref<16x1xf32, #tpu.memory_space<vmem>>, vector<16x1xf32>
    %4 = vector.broadcast %3 : vector<16x1xf32> to vector<16x256xf32>
    %5 = arith.mulf %2, %4 : vector<16x256xf32>
    %c0_5 = arith.constant 0 : index
    %c0_6 = arith.constant 0 : index
    %6 = vector.load %arg4[%c0_5, %c0_6] : memref<16x1xf32, #tpu.memory_space<vmem>>, vector<16x1xf32>
    %7 = vector.broadcast %6 : vector<16x1xf32> to vector<16x256xf32>
    %8 = arith.addf %5, %7 : vector<16x256xf32>
    %c0_7 = arith.constant 0 : index
    %c0_8 = arith.constant 0 : index
    %9 = vector.load %arg5[%c0_7, %c0_8] : memref<4x8xf32, #tpu.memory_space<vmem>>, vector<4x8xf32>
    %cst_9 = arith.constant dense<0.000000e+00> : vector<4x256xf32>
    %10 = tpu.matmul %9, %0, %cst_9 {dimension_numbers = #tpu.dot_dimension_numbers<[1], [0], [0], [1], [0, 0, 1, 1], [], []>} : vector<4x8xf32>, vector<8x256xf32>, vector<4x256xf32> -> vector<4x256xf32>
    %c0_10 = arith.constant 0 : index
    %c0_11 = arith.constant 0 : index
    %11 = vector.load %arg6[%c0_10, %c0_11] : memref<4x1xf32, #tpu.memory_space<vmem>>, vector<4x1xf32>
    %12 = vector.broadcast %11 : vector<4x1xf32> to vector<4x256xf32>
    %13 = arith.mulf %10, %12 : vector<4x256xf32>
    %c0_12 = arith.constant 0 : index
    %c0_13 = arith.constant 0 : index
    %14 = vector.load %arg7[%c0_12, %c0_13] : memref<4x1xf32, #tpu.memory_space<vmem>>, vector<4x1xf32>
    %15 = vector.broadcast %14 : vector<4x1xf32> to vector<4x256xf32>
    %16 = arith.addf %13, %15 : vector<4x256xf32>
    %17 = tpu.iota {dimensions = array<i32: 1>} : vector<4x256xi32>
    %c128_i32 = arith.constant 128 : i32
    %c0_i32 = arith.constant 0 : i32
    %18 = arith.cmpi eq, %c128_i32, %c0_i32 : i32
    %c1_i32 = arith.constant 1 : i32
    %19 = arith.select %18, %c1_i32, %c128_i32 : i32
    %20 = vector.broadcast %19 : i32 to vector<4x256xi32>
    %21 = arith.remsi %17, %20 : vector<4x256xi32>
    %c0_i32_14 = arith.constant 0 : i32
    %22 = vector.broadcast %c0_i32_14 : i32 to vector<4x256xi32>
    %23 = arith.cmpi ne, %21, %22 : vector<4x256xi32>
    %c0_i32_15 = arith.constant 0 : i32
    %24 = vector.broadcast %c0_i32_15 : i32 to vector<4x256xi32>
    %25 = arith.cmpi slt, %21, %24 : vector<4x256xi32>
    %c0_i32_16 = arith.constant 0 : i32
    %26 = arith.cmpi slt, %19, %c0_i32_16 : i32
    %27 = vector.broadcast %26 : i1 to vector<4x256xi1>
    %28 = vector.broadcast %27 : vector<4x256xi1> to vector<4x256xi1>
    %29 = arith.xori %25, %28 : vector<4x256xi1>
    %30 = arith.andi %29, %23 : vector<4x256xi1>
    %31 = vector.broadcast %19 : i32 to vector<4x256xi32>
    %32 = arith.addi %21, %31 : vector<4x256xi32>
    %33 = arith.select %30, %32, %21 : vector<4x256xi1>, vector<4x256xi32>
    %c1_i32_17 = arith.constant 1 : i32
    %34 = vector.broadcast %c1_i32_17 : i32 to vector<4x256xi32>
    %35 = arith.cmpi sge, %33, %34 : vector<4x256xi32>
    %c2_i32 = arith.constant 2 : i32
    %36 = vector.broadcast %c2_i32 : i32 to vector<4x256xi32>
    %37 = arith.cmpi sge, %33, %36 : vector<4x256xi32>
    %c4_i32 = arith.constant 4 : i32
    %38 = vector.broadcast %c4_i32 : i32 to vector<4x256xi32>
    %39 = arith.cmpi sge, %33, %38 : vector<4x256xi32>
    %c8_i32 = arith.constant 8 : i32
    %40 = vector.broadcast %c8_i32 : i32 to vector<4x256xi32>
    %41 = arith.cmpi sge, %33, %40 : vector<4x256xi32>
    %c16_i32 = arith.constant 16 : i32
    %42 = vector.broadcast %c16_i32 : i32 to vector<4x256xi32>
    %43 = arith.cmpi sge, %33, %42 : vector<4x256xi32>
    %c2_i32_18 = arith.constant 2 : i32
    %44 = tpu.dynamic_rotate %16 by %c2_i32_18 dim 1 : vector<4x256xf32>, i32 -> vector<4x256xf32>
    %cst_19 = arith.constant 0.000000e+00 : f32
    %45 = vector.broadcast %cst_19 : f32 to vector<4x256xf32>
    %46 = arith.select %37, %44, %45 : vector<4x256xi1>, vector<4x256xf32>
    %c0_20 = arith.constant 0 : index
    %c0_21 = arith.constant 0 : index
    %c0_22 = arith.constant 0 : index
    %47 = vector.load %arg8[%c0_20, %c0_21, %c0_22] : memref<12x4x4xf32, #tpu.memory_space<vmem>>, vector<1x4x4xf32>
    %48 = vector.shape_cast %47 : vector<1x4x4xf32> to vector<4x4xf32>
    %cst_23 = arith.constant dense<0.000000e+00> : vector<4x256xf32>
    %49 = tpu.matmul %48, %46, %cst_23 {dimension_numbers = #tpu.dot_dimension_numbers<[1], [0], [0], [1], [0, 0, 1, 1], [], []>} : vector<4x4xf32>, vector<4x256xf32>, vector<4x256xf32> -> vector<4x256xf32>
    %c1_i32_24 = arith.constant 1 : i32
    %50 = tpu.dynamic_rotate %16 by %c1_i32_24 dim 1 : vector<4x256xf32>, i32 -> vector<4x256xf32>
    %cst_25 = arith.constant 0.000000e+00 : f32
    %51 = vector.broadcast %cst_25 : f32 to vector<4x256xf32>
    %52 = arith.select %35, %50, %51 : vector<4x256xi1>, vector<4x256xf32>
    %c1 = arith.constant 1 : index
    %c0_26 = arith.constant 0 : index
    %c0_27 = arith.constant 0 : index
    %53 = vector.load %arg8[%c1, %c0_26, %c0_27] : memref<12x4x4xf32, #tpu.memory_space<vmem>>, vector<1x4x4xf32>
    %54 = vector.shape_cast %53 : vector<1x4x4xf32> to vector<4x4xf32>
    %cst_28 = arith.constant dense<0.000000e+00> : vector<4x256xf32>
    %55 = tpu.matmul %54, %52, %cst_28 {dimension_numbers = #tpu.dot_dimension_numbers<[1], [0], [0], [1], [0, 0, 1, 1], [], []>} : vector<4x4xf32>, vector<4x256xf32>, vector<4x256xf32> -> vector<4x256xf32>
    %56 = arith.addf %49, %55 : vector<4x256xf32>
    %c2 = arith.constant 2 : index
    %c0_29 = arith.constant 0 : index
    %c0_30 = arith.constant 0 : index
    %57 = vector.load %arg8[%c2, %c0_29, %c0_30] : memref<12x4x4xf32, #tpu.memory_space<vmem>>, vector<1x4x4xf32>
    %58 = vector.shape_cast %57 : vector<1x4x4xf32> to vector<4x4xf32>
    %cst_31 = arith.constant dense<0.000000e+00> : vector<4x256xf32>
    %59 = tpu.matmul %58, %16, %cst_31 {dimension_numbers = #tpu.dot_dimension_numbers<[1], [0], [0], [1], [0, 0, 1, 1], [], []>} : vector<4x4xf32>, vector<4x256xf32>, vector<4x256xf32> -> vector<4x256xf32>
    %60 = arith.addf %56, %59 : vector<4x256xf32>
    %c0_32 = arith.constant 0 : index
    %c0_33 = arith.constant 0 : index
    %c0_34 = arith.constant 0 : index
    %61 = vector.load %arg9[%c0_32, %c0_33, %c0_34] : memref<4x4x1xf32, #tpu.memory_space<vmem>>, vector<1x4x1xf32>
    %62 = vector.shape_cast %61 : vector<1x4x1xf32> to vector<4x1xf32>
    %63 = vector.broadcast %62 : vector<4x1xf32> to vector<4x256xf32>
    %64 = arith.mulf %60, %63 : vector<4x256xf32>
    %c0_35 = arith.constant 0 : index
    %c0_36 = arith.constant 0 : index
    %c0_37 = arith.constant 0 : index
    %65 = vector.load %arg10[%c0_35, %c0_36, %c0_37] : memref<4x4x1xf32, #tpu.memory_space<vmem>>, vector<1x4x1xf32>
    %66 = vector.shape_cast %65 : vector<1x4x1xf32> to vector<4x1xf32>
    %67 = vector.broadcast %66 : vector<4x1xf32> to vector<4x256xf32>
    %68 = arith.addf %64, %67 : vector<4x256xf32>
    %cst_38 = arith.constant 0.000000e+00 : f32
    %69 = vector.broadcast %cst_38 : f32 to vector<4x256xf32>
    %70 = arith.maximumf %68, %69 : vector<4x256xf32>
    %c4_i32_39 = arith.constant 4 : i32
    %71 = tpu.dynamic_rotate %70 by %c4_i32_39 dim 1 : vector<4x256xf32>, i32 -> vector<4x256xf32>
    %cst_40 = arith.constant 0.000000e+00 : f32
    %72 = vector.broadcast %cst_40 : f32 to vector<4x256xf32>
    %73 = arith.select %39, %71, %72 : vector<4x256xi1>, vector<4x256xf32>
    %c3 = arith.constant 3 : index
    %c0_41 = arith.constant 0 : index
    %c0_42 = arith.constant 0 : index
    %74 = vector.load %arg8[%c3, %c0_41, %c0_42] : memref<12x4x4xf32, #tpu.memory_space<vmem>>, vector<1x4x4xf32>
    %75 = vector.shape_cast %74 : vector<1x4x4xf32> to vector<4x4xf32>
    %cst_43 = arith.constant dense<0.000000e+00> : vector<4x256xf32>
    %76 = tpu.matmul %75, %73, %cst_43 {dimension_numbers = #tpu.dot_dimension_numbers<[1], [0], [0], [1], [0, 0, 1, 1], [], []>} : vector<4x4xf32>, vector<4x256xf32>, vector<4x256xf32> -> vector<4x256xf32>
    %c2_i32_44 = arith.constant 2 : i32
    %77 = tpu.dynamic_rotate %70 by %c2_i32_44 dim 1 : vector<4x256xf32>, i32 -> vector<4x256xf32>
    %cst_45 = arith.constant 0.000000e+00 : f32
    %78 = vector.broadcast %cst_45 : f32 to vector<4x256xf32>
    %79 = arith.select %37, %77, %78 : vector<4x256xi1>, vector<4x256xf32>
    %c4 = arith.constant 4 : index
    %c0_46 = arith.constant 0 : index
    %c0_47 = arith.constant 0 : index
    %80 = vector.load %arg8[%c4, %c0_46, %c0_47] : memref<12x4x4xf32, #tpu.memory_space<vmem>>, vector<1x4x4xf32>
    %81 = vector.shape_cast %80 : vector<1x4x4xf32> to vector<4x4xf32>
    %cst_48 = arith.constant dense<0.000000e+00> : vector<4x256xf32>
    %82 = tpu.matmul %81, %79, %cst_48 {dimension_numbers = #tpu.dot_dimension_numbers<[1], [0], [0], [1], [0, 0, 1, 1], [], []>} : vector<4x4xf32>, vector<4x256xf32>, vector<4x256xf32> -> vector<4x256xf32>
    %83 = arith.addf %76, %82 : vector<4x256xf32>
    %c5 = arith.constant 5 : index
    %c0_49 = arith.constant 0 : index
    %c0_50 = arith.constant 0 : index
    %84 = vector.load %arg8[%c5, %c0_49, %c0_50] : memref<12x4x4xf32, #tpu.memory_space<vmem>>, vector<1x4x4xf32>
    %85 = vector.shape_cast %84 : vector<1x4x4xf32> to vector<4x4xf32>
    %cst_51 = arith.constant dense<0.000000e+00> : vector<4x256xf32>
    %86 = tpu.matmul %85, %70, %cst_51 {dimension_numbers = #tpu.dot_dimension_numbers<[1], [0], [0], [1], [0, 0, 1, 1], [], []>} : vector<4x4xf32>, vector<4x256xf32>, vector<4x256xf32> -> vector<4x256xf32>
    %87 = arith.addf %83, %86 : vector<4x256xf32>
    %c1_52 = arith.constant 1 : index
    %c0_53 = arith.constant 0 : index
    %c0_54 = arith.constant 0 : index
    %88 = vector.load %arg9[%c1_52, %c0_53, %c0_54] : memref<4x4x1xf32, #tpu.memory_space<vmem>>, vector<1x4x1xf32>
    %89 = vector.shape_cast %88 : vector<1x4x1xf32> to vector<4x1xf32>
    %90 = vector.broadcast %89 : vector<4x1xf32> to vector<4x256xf32>
    %91 = arith.mulf %87, %90 : vector<4x256xf32>
    %c1_55 = arith.constant 1 : index
    %c0_56 = arith.constant 0 : index
    %c0_57 = arith.constant 0 : index
    %92 = vector.load %arg10[%c1_55, %c0_56, %c0_57] : memref<4x4x1xf32, #tpu.memory_space<vmem>>, vector<1x4x1xf32>
    %93 = vector.shape_cast %92 : vector<1x4x1xf32> to vector<4x1xf32>
    %94 = vector.broadcast %93 : vector<4x1xf32> to vector<4x256xf32>
    %95 = arith.addf %91, %94 : vector<4x256xf32>
    %cst_58 = arith.constant 0.000000e+00 : f32
    %96 = vector.broadcast %cst_58 : f32 to vector<4x256xf32>
    %97 = arith.maximumf %95, %96 : vector<4x256xf32>
    %c8_i32_59 = arith.constant 8 : i32
    %98 = tpu.dynamic_rotate %97 by %c8_i32_59 dim 1 : vector<4x256xf32>, i32 -> vector<4x256xf32>
    %cst_60 = arith.constant 0.000000e+00 : f32
    %99 = vector.broadcast %cst_60 : f32 to vector<4x256xf32>
    %100 = arith.select %41, %98, %99 : vector<4x256xi1>, vector<4x256xf32>
    %c6 = arith.constant 6 : index
    %c0_61 = arith.constant 0 : index
    %c0_62 = arith.constant 0 : index
    %101 = vector.load %arg8[%c6, %c0_61, %c0_62] : memref<12x4x4xf32, #tpu.memory_space<vmem>>, vector<1x4x4xf32>
    %102 = vector.shape_cast %101 : vector<1x4x4xf32> to vector<4x4xf32>
    %cst_63 = arith.constant dense<0.000000e+00> : vector<4x256xf32>
    %103 = tpu.matmul %102, %100, %cst_63 {dimension_numbers = #tpu.dot_dimension_numbers<[1], [0], [0], [1], [0, 0, 1, 1], [], []>} : vector<4x4xf32>, vector<4x256xf32>, vector<4x256xf32> -> vector<4x256xf32>
    %c4_i32_64 = arith.constant 4 : i32
    %104 = tpu.dynamic_rotate %97 by %c4_i32_64 dim 1 : vector<4x256xf32>, i32 -> vector<4x256xf32>
    %cst_65 = arith.constant 0.000000e+00 : f32
    %105 = vector.broadcast %cst_65 : f32 to vector<4x256xf32>
    %106 = arith.select %39, %104, %105 : vector<4x256xi1>, vector<4x256xf32>
    %c7 = arith.constant 7 : index
    %c0_66 = arith.constant 0 : index
    %c0_67 = arith.constant 0 : index
    %107 = vector.load %arg8[%c7, %c0_66, %c0_67] : memref<12x4x4xf32, #tpu.memory_space<vmem>>, vector<1x4x4xf32>
    %108 = vector.shape_cast %107 : vector<1x4x4xf32> to vector<4x4xf32>
    %cst_68 = arith.constant dense<0.000000e+00> : vector<4x256xf32>
    %109 = tpu.matmul %108, %106, %cst_68 {dimension_numbers = #tpu.dot_dimension_numbers<[1], [0], [0], [1], [0, 0, 1, 1], [], []>} : vector<4x4xf32>, vector<4x256xf32>, vector<4x256xf32> -> vector<4x256xf32>
    %110 = arith.addf %103, %109 : vector<4x256xf32>
    %c8 = arith.constant 8 : index
    %c0_69 = arith.constant 0 : index
    %c0_70 = arith.constant 0 : index
    %111 = vector.load %arg8[%c8, %c0_69, %c0_70] : memref<12x4x4xf32, #tpu.memory_space<vmem>>, vector<1x4x4xf32>
    %112 = vector.shape_cast %111 : vector<1x4x4xf32> to vector<4x4xf32>
    %cst_71 = arith.constant dense<0.000000e+00> : vector<4x256xf32>
    %113 = tpu.matmul %112, %97, %cst_71 {dimension_numbers = #tpu.dot_dimension_numbers<[1], [0], [0], [1], [0, 0, 1, 1], [], []>} : vector<4x4xf32>, vector<4x256xf32>, vector<4x256xf32> -> vector<4x256xf32>
    %114 = arith.addf %110, %113 : vector<4x256xf32>
    %c2_72 = arith.constant 2 : index
    %c0_73 = arith.constant 0 : index
    %c0_74 = arith.constant 0 : index
    %115 = vector.load %arg9[%c2_72, %c0_73, %c0_74] : memref<4x4x1xf32, #tpu.memory_space<vmem>>, vector<1x4x1xf32>
    %116 = vector.shape_cast %115 : vector<1x4x1xf32> to vector<4x1xf32>
    %117 = vector.broadcast %116 : vector<4x1xf32> to vector<4x256xf32>
    %118 = arith.mulf %114, %117 : vector<4x256xf32>
    %c2_75 = arith.constant 2 : index
    %c0_76 = arith.constant 0 : index
    %c0_77 = arith.constant 0 : index
    %119 = vector.load %arg10[%c2_75, %c0_76, %c0_77] : memref<4x4x1xf32, #tpu.memory_space<vmem>>, vector<1x4x1xf32>
    %120 = vector.shape_cast %119 : vector<1x4x1xf32> to vector<4x1xf32>
    %121 = vector.broadcast %120 : vector<4x1xf32> to vector<4x256xf32>
    %122 = arith.addf %118, %121 : vector<4x256xf32>
    %cst_78 = arith.constant 0.000000e+00 : f32
    %123 = vector.broadcast %cst_78 : f32 to vector<4x256xf32>
    %124 = arith.maximumf %122, %123 : vector<4x256xf32>
    %c16_i32_79 = arith.constant 16 : i32
    %125 = tpu.dynamic_rotate %124 by %c16_i32_79 dim 1 : vector<4x256xf32>, i32 -> vector<4x256xf32>
    %cst_80 = arith.constant 0.000000e+00 : f32
    %126 = vector.broadcast %cst_80 : f32 to vector<4x256xf32>
    %127 = arith.select %43, %125, %126 : vector<4x256xi1>, vector<4x256xf32>
    %c9 = arith.constant 9 : index
    %c0_81 = arith.constant 0 : index
    %c0_82 = arith.constant 0 : index
    %128 = vector.load %arg8[%c9, %c0_81, %c0_82] : memref<12x4x4xf32, #tpu.memory_space<vmem>>, vector<1x4x4xf32>
    %129 = vector.shape_cast %128 : vector<1x4x4xf32> to vector<4x4xf32>
    %cst_83 = arith.constant dense<0.000000e+00> : vector<4x256xf32>
    %130 = tpu.matmul %129, %127, %cst_83 {dimension_numbers = #tpu.dot_dimension_numbers<[1], [0], [0], [1], [0, 0, 1, 1], [], []>} : vector<4x4xf32>, vector<4x256xf32>, vector<4x256xf32> -> vector<4x256xf32>
    %c8_i32_84 = arith.constant 8 : i32
    %131 = tpu.dynamic_rotate %124 by %c8_i32_84 dim 1 : vector<4x256xf32>, i32 -> vector<4x256xf32>
    %cst_85 = arith.constant 0.000000e+00 : f32
    %132 = vector.broadcast %cst_85 : f32 to vector<4x256xf32>
    %133 = arith.select %41, %131, %132 : vector<4x256xi1>, vector<4x256xf32>
    %c10 = arith.constant 10 : index
    %c0_86 = arith.constant 0 : index
    %c0_87 = arith.constant 0 : index
    %134 = vector.load %arg8[%c10, %c0_86, %c0_87] : memref<12x4x4xf32, #tpu.memory_space<vmem>>, vector<1x4x4xf32>
    %135 = vector.shape_cast %134 : vector<1x4x4xf32> to vector<4x4xf32>
    %cst_88 = arith.constant dense<0.000000e+00> : vector<4x256xf32>
    %136 = tpu.matmul %135, %133, %cst_88 {dimension_numbers = #tpu.dot_dimension_numbers<[1], [0], [0], [1], [0, 0, 1, 1], [], []>} : vector<4x4xf32>, vector<4x256xf32>, vector<4x256xf32> -> vector<4x256xf32>
    %137 = arith.addf %130, %136 : vector<4x256xf32>
    %c11 = arith.constant 11 : index
    %c0_89 = arith.constant 0 : index
    %c0_90 = arith.constant 0 : index
    %138 = vector.load %arg8[%c11, %c0_89, %c0_90] : memref<12x4x4xf32, #tpu.memory_space<vmem>>, vector<1x4x4xf32>
    %139 = vector.shape_cast %138 : vector<1x4x4xf32> to vector<4x4xf32>
    %cst_91 = arith.constant dense<0.000000e+00> : vector<4x256xf32>
    %140 = tpu.matmul %139, %124, %cst_91 {dimension_numbers = #tpu.dot_dimension_numbers<[1], [0], [0], [1], [0, 0, 1, 1], [], []>} : vector<4x4xf32>, vector<4x256xf32>, vector<4x256xf32> -> vector<4x256xf32>
    %141 = arith.addf %137, %140 : vector<4x256xf32>
    %c3_92 = arith.constant 3 : index
    %c0_93 = arith.constant 0 : index
    %c0_94 = arith.constant 0 : index
    %142 = vector.load %arg9[%c3_92, %c0_93, %c0_94] : memref<4x4x1xf32, #tpu.memory_space<vmem>>, vector<1x4x1xf32>
    %143 = vector.shape_cast %142 : vector<1x4x1xf32> to vector<4x1xf32>
    %144 = vector.broadcast %143 : vector<4x1xf32> to vector<4x256xf32>
    %145 = arith.mulf %141, %144 : vector<4x256xf32>
    %c3_95 = arith.constant 3 : index
    %c0_96 = arith.constant 0 : index
    %c0_97 = arith.constant 0 : index
    %146 = vector.load %arg10[%c3_95, %c0_96, %c0_97] : memref<4x4x1xf32, #tpu.memory_space<vmem>>, vector<1x4x1xf32>
    %147 = vector.shape_cast %146 : vector<1x4x1xf32> to vector<4x1xf32>
    %148 = vector.broadcast %147 : vector<4x1xf32> to vector<4x256xf32>
    %149 = arith.addf %145, %148 : vector<4x256xf32>
    %cst_98 = arith.constant 0.000000e+00 : f32
    %150 = vector.broadcast %cst_98 : f32 to vector<4x256xf32>
    %151 = arith.maximumf %149, %150 : vector<4x256xf32>
    %152 = arith.negf %151 : vector<4x256xf32>
    %153 = math.exp %152 : vector<4x256xf32>
    %cst_99 = arith.constant 1.000000e+00 : f32
    %154 = vector.broadcast %cst_99 : f32 to vector<4x256xf32>
    %155 = arith.addf %154, %153 : vector<4x256xf32>
    %156 = arith.divf %154, %155 : vector<4x256xf32>
    %157 = arith.mulf %151, %156 : vector<4x256xf32>
    %c0_100 = arith.constant 0 : index
    %c0_101 = arith.constant 0 : index
    %158 = vector.load %arg11[%c0_100, %c0_101] : memref<16x4xf32, #tpu.memory_space<vmem>>, vector<16x4xf32>
    %cst_102 = arith.constant dense<0.000000e+00> : vector<16x256xf32>
    %159 = tpu.matmul %158, %157, %cst_102 {dimension_numbers = #tpu.dot_dimension_numbers<[1], [0], [0], [1], [0, 0, 1, 1], [], []>} : vector<16x4xf32>, vector<4x256xf32>, vector<16x256xf32> -> vector<16x256xf32>
    %c0_103 = arith.constant 0 : index
    %c0_104 = arith.constant 0 : index
    %160 = vector.load %arg12[%c0_103, %c0_104] : memref<16x1xf32, #tpu.memory_space<vmem>>, vector<16x1xf32>
    %161 = vector.broadcast %160 : vector<16x1xf32> to vector<16x256xf32>
    %162 = arith.mulf %159, %161 : vector<16x256xf32>
    %c0_105 = arith.constant 0 : index
    %c0_106 = arith.constant 0 : index
    %163 = vector.load %arg13[%c0_105, %c0_106] : memref<16x1xf32, #tpu.memory_space<vmem>>, vector<16x1xf32>
    %164 = vector.broadcast %163 : vector<16x1xf32> to vector<16x256xf32>
    %165 = arith.addf %162, %164 : vector<16x256xf32>
    %166 = arith.addf %8, %165 : vector<16x256xf32>
    %cst_107 = arith.constant 0.000000e+00 : f32
    %167 = vector.broadcast %cst_107 : f32 to vector<16x256xf32>
    %168 = arith.maximumf %166, %167 : vector<16x256xf32>
    %c0_108 = arith.constant 0 : index
    %c0_109 = arith.constant 0 : index
    %169 = vector.load %arg14[%c0_108, %c0_109] : memref<16x256xf32, #tpu.memory_space<vmem>>, vector<16x256xf32>
    tpu.vector_store %arg14[%c0_108, %c0_109], %168 {strides = array<i32>} : memref<16x256xf32, #tpu.memory_space<vmem>>, vector<16x256xf32>,
    return
  }
  func.func @transform_0(%arg0: i32) -> (i32, i32) {
    %c0_i32 = arith.constant 0 : i32
    %c0_i32_0 = arith.constant 0 : i32
    return %c0_i32, %arg0 : i32, i32
  }
  func.func @transform_1(%arg0: i32) -> (i32, i32) {
    %c0_i32 = arith.constant 0 : i32
    %c0_i32_0 = arith.constant 0 : i32
    %c0_i32_1 = arith.constant 0 : i32
    return %c0_i32, %c0_i32_0 : i32, i32
  }
  func.func @transform_2(%arg0: i32) -> (i32, i32) {
    %c0_i32 = arith.constant 0 : i32
    %c0_i32_0 = arith.constant 0 : i32
    %c0_i32_1 = arith.constant 0 : i32
    return %c0_i32, %c0_i32_0 : i32, i32
  }
  func.func @transform_3(%arg0: i32) -> (i32, i32) {
    %c0_i32 = arith.constant 0 : i32
    %c0_i32_0 = arith.constant 0 : i32
    %c0_i32_1 = arith.constant 0 : i32
    return %c0_i32, %c0_i32_0 : i32, i32
  }
  func.func @transform_4(%arg0: i32) -> (i32, i32) {
    %c0_i32 = arith.constant 0 : i32
    %c0_i32_0 = arith.constant 0 : i32
    %c0_i32_1 = arith.constant 0 : i32
    return %c0_i32, %c0_i32_0 : i32, i32
  }
  func.func @transform_5(%arg0: i32) -> (i32, i32) {
    %c0_i32 = arith.constant 0 : i32
    %c0_i32_0 = arith.constant 0 : i32
    %c0_i32_1 = arith.constant 0 : i32
    return %c0_i32, %c0_i32_0 : i32, i32
  }
  func.func @transform_6(%arg0: i32) -> (i32, i32) {
    %c0_i32 = arith.constant 0 : i32
    %c0_i32_0 = arith.constant 0 : i32
    %c0_i32_1 = arith.constant 0 : i32
    return %c0_i32, %c0_i32_0 : i32, i32
  }
  func.func @transform_7(%arg0: i32) -> (i32, i32, i32) {
    %c0_i32 = arith.constant 0 : i32
    %c0_i32_0 = arith.constant 0 : i32
    %c0_i32_1 = arith.constant 0 : i32
    %c0_i32_2 = arith.constant 0 : i32
    return %c0_i32, %c0_i32_0, %c0_i32_1 : i32, i32, i32
  }
  func.func @transform_8(%arg0: i32) -> (i32, i32, i32) {
    %c0_i32 = arith.constant 0 : i32
    %c0_i32_0 = arith.constant 0 : i32
    %c0_i32_1 = arith.constant 0 : i32
    %c0_i32_2 = arith.constant 0 : i32
    return %c0_i32, %c0_i32_0, %c0_i32_1 : i32, i32, i32
  }
  func.func @transform_9(%arg0: i32) -> (i32, i32, i32) {
    %c0_i32 = arith.constant 0 : i32
    %c0_i32_0 = arith.constant 0 : i32
    %c0_i32_1 = arith.constant 0 : i32
    %c0_i32_2 = arith.constant 0 : i32
    return %c0_i32, %c0_i32_0, %c0_i32_1 : i32, i32, i32
  }
  func.func @transform_10(%arg0: i32) -> (i32, i32) {
    %c0_i32 = arith.constant 0 : i32
    %c0_i32_0 = arith.constant 0 : i32
    %c0_i32_1 = arith.constant 0 : i32
    return %c0_i32, %c0_i32_0 : i32, i32
  }
  func.func @transform_11(%arg0: i32) -> (i32, i32) {
    %c0_i32 = arith.constant 0 : i32
    %c0_i32_0 = arith.constant 0 : i32
    %c0_i32_1 = arith.constant 0 : i32
    return %c0_i32, %c0_i32_0 : i32, i32
  }
  func.func @transform_12(%arg0: i32) -> (i32, i32) {
    %c0_i32 = arith.constant 0 : i32
    %c0_i32_0 = arith.constant 0 : i32
    %c0_i32_1 = arith.constant 0 : i32
    return %c0_i32, %c0_i32_0 : i32, i32
  }
  func.func @transform_13(%arg0: i32) -> (i32, i32) {
    %c0_i32 = arith.constant 0 : i32
    %c0_i32_0 = arith.constant 0 : i32
    return %c0_i32, %arg0 : i32, i32
  }
}

</mosaic_0001>

<bundles_post_ra>
// kernel: tpu_custom_call.1
= control target key start
LH: loop header
LB: loop body
LE: loop exit
PB: predicated region body
PF: predicated region fallthrough
CT: control target
= control target key end

     0   :  { %vm49_vm0 = vcmask 64512   ;;  %v1719_v3 = vmov 0.0   ;;  %v1720_v5 = vmov 0   ;;  %s2076_s0 = inlined_call_operand.vmem [shape: f32[8,256], index: 0, kind: input, shape index: {}]   ;;  %s2077_s1 = inlined_call_operand.vmem [shape: f32[16,8], index: 1, kind: input, shape index: {}]   ;;  %s2078_s2 = inlined_call_operand.vmem [shape: f32[16,1], index: 2, kind: input, shape index: {}]   ;;  %s2079_s3 = inlined_call_operand.vmem [shape: f32[16,1], index: 3, kind: input, shape index: {}]   ;;  %s2080_s4 = inlined_call_operand.vmem [shape: f32[4,8], index: 4, kind: input, shape index: {}]   ;;  %s2081_s5 = inlined_call_operand.vmem [shape: f32[4,1], index: 5, kind: input, shape index: {}]   ;;  %s2082_s6 = inlined_call_operand.vmem [shape: f32[4,1], index: 6, kind: input, shape index: {}]   ;;  %s2083_s7 = inlined_call_operand.vmem [shape: f32[12,4,4], index: 7, kind: input, shape index: {}]   ;;  %s2084_s8 = inlined_call_operand.vmem [shape: f32[4,4,1], index: 8, kind: input, shape index: {}]   ;;  %s2085_s9 = inlined_call_operand.vmem [shape: f32[4,4,1], index: 9, kind: input, shape index: {}]   ;;  %s2086_s10 = inlined_call_operand.vmem [shape: f32[16,4], index: 10, kind: input, shape index: {}]   ;;  %s2087_s11 = inlined_call_operand.vmem [shape: f32[16,1], index: 11, kind: input, shape index: {}]   ;;  %s2088_s12 = inlined_call_operand.vmem [shape: f32[16,1], index: 12, kind: input, shape index: {}]   ;;  %s2089_s13 = inlined_call_operand.hbm [shape: f32[16,256], index: 13, kind: output, shape index: {}]  }
   0x1   :  { %v46_v0 = vld [vmem:[%s2076_s0 + $0x8] sm:$0xff]  ;;  %v45_v1 = vld [vmem:[%s2076_s0] sm:$0xff]  ;;  %233 = vmatprep.mubr.f32.mxu1 %v1719_v3  ;;  %1685 = vset.pattern.permute.xlu0 %v1720_v5 }
   0x2   :  { %v165_v2 = vld [vmem:[%s2080_s4] sm:$0xf]  ;;  %169 = vmatprep.subr.mxu1 %v46_v0 }
   0x3   :  { %v240_v4 = vld [vmem:[%s2081_s5] sm:$0xf]  ;;  %170 = vmatpush1.msra.mxu1 %v45_v1 }
   0x4   :  { %18 = vsyncpa [#allocation3], 0  ;;  %1600 = vmatmul.mubr.msk.f32.vlgmr.msra.gmra.mrb[0].mxu1 %vm49_vm0, %v165_v2  ;;  %243 = vperm.xlu0 %1685, %v240_v4   ;;  %v248_v6 = vld [vmem:[%s2082_s6] sm:$0xf]  ;;  %s1721_s4 = smov 2   ;;  %s1722_s5 = smov 1   ;;  %v256_v17 = vlaneseq }
   0x5   :  { %389 = vmatprep.mubr.f32.mxu1 %v1719_v3  ;;  %1686 = vset.pattern.permute.xlu1 %v1720_v5  ;;  %v560_v14 = vld [vmem:[%s2084_s8] sm:$0xf]  ;;  %vm318_vm4 = vcmask 1043456   ;;  %v1601_v27 = vld [vmem:[%s2083_s7 + $0x4] sm:$0xf]  ;;  %vm314_vm6 = vcmask 31744  }
   0x6   :  { %56 = vmatprep.subr.mxu0 %v46_v0  ;;  %120 = vmatprep.mubr.f32.mxu0 %v1719_v3  ;;  %v568_v16 = vld [vmem:[%s2085_s9] sm:$0xf]  ;;  %v1825_v18 = vand.u32 127, %v256_v17  ;;  %v1608_v35 = vld [vmem:[%s2083_s7 + $0x8] sm:$0xf]  ;;  %s1723_s30 = smov 4  }
   0x7   :  { %57 = vmatpush1.msra.mxu0 %v45_v1  ;;  %v302_v34 = vld [vmem:[%s2083_s7] sm:$0xf]  ;;  %v48_v37 = vld [vmem:[%s2077_s1 + $0x8] sm:$0xff]  ;;  %v1624_v48 = vld [vmem:[%s2084_s8 + $0x4] sm:$0xf]  ;;  %s1724_s19 = smov 8  }
   0x8   :  { %251 = vperm.xlu0 %1685, %v248_v6   ;;  %v258_v19 = vadd.s32 128, %v1825_v18  ;;  %vm307_vm1 = vcmp.lt.s32.totalorder %v1825_v18, 1  ;;  %vm283_vm2 = vcmp.ge.s32.totalorder %v1825_v18, 1  ;;  %vm297_vm5 = vcmp.lt.s32.totalorder %v1825_v18, 2  ;;  %v47_v36 = vld [vmem:[%s2077_s1] sm:$0xff] }
   0x9   :  { %vm285_vm7 = vcmp.ge.s32.totalorder %v1825_v18, 2  ;;  %1598 = vmatmul.mubr.msk.f32.vlgmr.msra.gmra.mrb[0].mxu0 %vm49_vm0, %v47_v36  ;;  %v1625_v49 = vld [vmem:[%s2085_s9 + $0x4] sm:$0xf]  ;;  %vm582_vm9 = vcmp.lt.s32.totalorder %v1825_v18, 4  ;;  %v1613_v58 = vld [vmem:[%s2083_s7 + $0x10] sm:$0xf] }
   0xa   :  { %v1828_v20 = vand.u32 127, %v258_v19  ;;  %126 = vmatprep.mubr.f32.mxu0 %v1719_v3  ;;  %vm287_vm10 = vcmp.ge.s32.totalorder %v1825_v18, 4  ;;  %v1612_v1 = vld [vmem:[%s2083_s7 + $0xc] sm:$0xf]  ;;  %v1620_v2 = vld [vmem:[%s2083_s7 + $0x14] sm:$0xf] }
   0xb   :  { %v1639_v17 = vld [vmem:[%s2085_s9 + $0x8] sm:$0xf]  ;;  %vm867_vm12 = vcmp.lt.s32.totalorder %v1825_v18, 8  ;;  %vm289_vm13 = vcmp.ge.s32.totalorder %v1825_v18, 8  ;;  %vm1152_vm15 = vcmp.lt.s32.totalorder %v1825_v18, 16 }
   0xc   :  { %vm284_vm3 = vcmp.ge.s32.totalorder %v1828_v20, 1  ;;  %vm286_vm8 = vcmp.ge.s32.totalorder %v1828_v20, 2  ;;  %vm288_vm11 = vcmp.ge.s32.totalorder %v1828_v20, 4  ;;  %vm290_vm14 = vcmp.ge.s32.totalorder %v1828_v20, 8 }
   0xd   :  { %1599 = vmatmul.mubr.msk.f32.gmra.mrb[2].mxu0 %vm49_vm0, %v48_v37  ;;  %vm291_vm0 = vcmp.ge.s32.totalorder %v1825_v18, 16  ;;  %v1640_v18 = vld [vmem:[%s2083_s7 + $0x24] sm:$0xf] }
   0xe   :  { %672 = vmatprep.mubr.f32.mxu0 %v1719_v3 }
  0x83   :  { %v244_v7 = vpop.permute.xlu0 %243 }
  0x87   :  { %v252_v11 = vpop.permute.xlu0 %251 }
  0xd7   :  { %v235_v8 = vpop.f32.mrb[0].mxu1 }
  0xd8   :  { %v246_v9 = vmul.f32 %v244_v7, %v235_v8  ;;  %v237_v10 = vpop.f32.mrb[1].mxu1 }
  0xd9   :  { %v247_v13 = vmul.f32 %v244_v7, %v237_v10 }
  0xda   :  { %v254_v12 = vadd.f32 %v252_v11, %v246_v9 }
  0xdb   :  { %v255_v15 = vadd.f32 %v252_v11, %v247_v13 }
  0xdc   :  { %293 = vrot.lane.b32.xlu0 %v254_v12, %s1721_s4  ;;  %303 = vrot.lane.b32.xlu1 %v254_v12, %s1722_s5  ;;  %v1885_v50 = vpop.f32.mrb[0].mxu0 }
  0xdd   :  { %v1887_v51 = vpop.f32.mrb[1].mxu0 }
  0xe0   :  { %563 = vperm.xlu0 %1685, %v560_v14   ;;  %305 = vrot.lane.b32.xlu1 %v255_v15, %s1722_s5  ;;  %v1929_v4 = vpop.f32.mrb[2].mxu0 }
  0xe1   :  { %v1931_v5 = vpop.f32.mrb[3].mxu0 }
  0xe4   :  { %295 = vrot.lane.b32.xlu1 %v255_v15, %s1721_s4 }
  0xe8   :  { %571 = vperm.xlu1 %1686, %v568_v16   ;;  %v1638_v16 = vld [vmem:[%s2084_s8 + $0x8] sm:$0xf] }
 0x14e   :  { %v304_v21 = vpop.permute.xlu1 %303  ;;  %v294_v28 = vpop.permute.xlu0 %293 }
 0x152   :  { %v306_v22 = vpop.permute.xlu1 %305 }
 0x153   :  { %v308_v23 = vsel %vm307_vm1, %v304_v21, %v306_v22  ;;  %v309_v24 = vsel %vm307_vm1, %v306_v22, %v304_v21  ;;  %vm292_vm1 = vcmp.ge.s32.totalorder %v1828_v20, 16  ;;  %v1648_v20 = vld [vmem:[%s2083_s7 + $0x2c] sm:$0xf] }
 0x154   :  { %v310_v25 = vsel %vm283_vm2, %v309_v24, 0.0  ;;  %v311_v26 = vsel %vm284_vm3, %v308_v23, 0.0 }
 0x155   :  { %1602 = vmatprep.subr.msk.mxu1 %vm318_vm4, %v311_v26  ;;  %v1627_v26 = vld [vmem:[%s2083_s7 + $0x1c] sm:$0xf] }
 0x156   :  { %1603 = vmatpush1.msk.msra.mxu1 %vm318_vm4, %v310_v25  ;;  %v296_v29 = vpop.permute.xlu1 %295 }
 0x157   :  { %v298_v30 = vsel %vm297_vm5, %v294_v28, %v296_v29  ;;  %v299_v31 = vsel %vm297_vm5, %v296_v29, %v294_v28  ;;  %1604 = vmatmul.mubr.msk.f32.vlgmr.msra.gmra.mrb[2].mxu1 %vm314_vm6, %v1601_v27 }
 0x158   :  { %v300_v32 = vsel %vm285_vm7, %v299_v31, 0.0  ;;  %v301_v33 = vsel %vm286_vm8, %v298_v30, 0.0  ;;  %469 = vmatprep.mubr.f32.mxu1 %v1719_v3 }
 0x159   :  { %1605 = vmatprep.subr.msk.mxu1 %vm318_vm4, %v301_v33  ;;  %v1626_v33 = vld [vmem:[%s2083_s7 + $0x18] sm:$0xf] }
 0x15a   :  { %1606 = vmatpush1.msk.msra.mxu1 %vm318_vm4, %v300_v32 }
 0x15b   :  { %1609 = vmatprep.subr.msk.mxu1 %vm318_vm4, %v255_v15 }
 0x15f   :  { %1607 = vmatmul.mubr.msk.f32.vlgmr.msra.gmra.mrb[2].mxu1 %vm314_vm6, %v302_v34  ;;  %v564_v38 = vpop.permute.xlu0 %563  ;;  %v1634_v34 = vld [vmem:[%s2083_s7 + $0x20] sm:$0xf] }
 0x160   :  { %1610 = vmatpush1.msk.msra.mxu1 %vm318_vm4, %v254_v12  ;;  %551 = vmatprep.mubr.f32.mxu1 %v1719_v3 }
 0x167   :  { %1611 = vmatmul.mubr.msk.f32.vlgmr.msra.gmra.mrb[2].mxu1 %vm314_vm6, %v1608_v35  ;;  %v572_v40 = vpop.permute.xlu1 %571 }
 0x168   :  { %957 = vmatprep.mubr.f32.mxu1 %v1719_v3 }
 0x23a   :  { %v553_v39 = vpop.f32.mrb[2].mxu1 }
 0x23b   :  { %v566_v41 = vmul.f32 %v564_v38, %v553_v39  ;;  %v555_v42 = vpop.f32.mrb[3].mxu1 }
 0x23c   :  { %v567_v43 = vmul.f32 %v564_v38, %v555_v42 }
 0x23d   :  { %v574_v44 = vadd.f32 %v572_v40, %v566_v41 }
 0x23e   :  { %v575_v45 = vadd.f32 %v572_v40, %v567_v43 }
 0x23f   :  { %v576_v46 = vmax.f32 %v574_v44, 0.0 }
 0x240   :  { %v577_v47 = vmax.f32 %v575_v45, 0.0  ;;  %v1652_v45 = vld [vmem:[%s2084_s8 + $0xc] sm:$0xf] }
 0x241   :  { %589 = vrot.lane.b32.xlu0 %v576_v46, %s1721_s4 }
 0x242   :  { %591 = vrot.lane.b32.xlu1 %v577_v47, %s1721_s4 }
 0x245   :  { %578 = vrot.lane.b32.xlu0 %v576_v46, %s1723_s30 }
 0x246   :  { %580 = vrot.lane.b32.xlu1 %v577_v47, %s1723_s30 }
 0x249   :  { %847 = vperm.xlu0 %1685, %v1624_v48   ;;  %v134_v48 = vld [vmem:[%s2078_s2 + $0x8] sm:$0xff] }
 0x24a   :  { %856 = vperm.xlu1 %1686, %v1625_v49   ;;  %v1538_v49 = vld [vmem:[%s2087_s11] sm:$0xff] }
 0x2b3   :  { %v590_v52 = vpop.permute.xlu0 %589 }
 0x2b4   :  { %v592_v53 = vpop.permute.xlu1 %591 }
 0x2b5   :  { %v593_v54 = vsel %vm297_vm5, %v590_v52, %v592_v53  ;;  %v594_v55 = vsel %vm297_vm5, %v592_v53, %v590_v52  ;;  %v1539_v52 = vld [vmem:[%s2087_s11 + $0x8] sm:$0xff]  ;;  %v149_v53 = vld [vmem:[%s2079_s3] sm:$0xff] }
 0x2b6   :  { %v595_v56 = vsel %vm285_vm7, %v594_v55, 0.0  ;;  %v596_v57 = vsel %vm286_vm8, %v593_v54, 0.0  ;;  %v150_v54 = vld [vmem:[%s2079_s3 + $0x8] sm:$0xff]  ;;  %v1554_v55 = vld [vmem:[%s2088_s12] sm:$0xff] }
 0x2b7   :  { %v579_v59 = vpop.permute.xlu0 %578  ;;  %1614 = vmatprep.subr.msk.mxu0 %vm318_vm4, %v596_v57 }
 0x2b8   :  { %v581_v60 = vpop.permute.xlu1 %580  ;;  %1615 = vmatpush1.msk.msra.mxu0 %vm318_vm4, %v595_v56  ;;  %v1555_v56 = vld [vmem:[%s2088_s12 + $0x8] sm:$0xff] }
 0x2b9   :  { %v583_v61 = vsel %vm582_vm9, %v579_v59, %v581_v60  ;;  %v584_v62 = vsel %vm582_vm9, %v581_v60, %v579_v59  ;;  %1616 = vmatmul.mubr.msk.f32.vlgmr.msra.gmra.mrb[4].mxu0 %vm314_vm6, %v1613_v58 }
 0x2ba   :  { %v585_v63 = vsel %vm287_vm10, %v584_v62, 0.0  ;;  %v586_v0 = vsel %vm288_vm11, %v583_v61, 0.0  ;;  %752 = vmatprep.mubr.f32.mxu0 %v1719_v3 }
 0x2bb   :  { %1617 = vmatprep.subr.msk.mxu0 %vm318_vm4, %v586_v0 }
 0x2bc   :  { %1618 = vmatpush1.msk.msra.mxu0 %vm318_vm4, %v585_v63  ;;  %v1641_v63 = vld [vmem:[%s2083_s7 + $0x28] sm:$0xf] }
 0x2bd   :  { %1621 = vmatprep.subr.msk.mxu0 %vm318_vm4, %v577_v47  ;;  %v133_v47 = vld [vmem:[%s2078_s2] sm:$0xff] }
 0x2c1   :  { %1619 = vmatmul.mubr.msk.f32.vlgmr.msra.gmra.mrb[4].mxu0 %vm314_vm6, %v1612_v1 }
 0x2c2   :  { %1622 = vmatpush1.msk.msra.mxu0 %vm318_vm4, %v576_v46  ;;  %834 = vmatprep.mubr.f32.mxu0 %v1719_v3  ;;  %v1653_v46 = vld [vmem:[%s2085_s9 + $0xc] sm:$0xf] }
 0x2c8   :  { %v848_v6 = vpop.permute.xlu0 %847 }
 0x2c9   :  { %1623 = vmatmul.mubr.msk.f32.vlgmr.msra.gmra.mrb[4].mxu0 %vm314_vm6, %v1620_v2  ;;  %v857_v10 = vpop.permute.xlu1 %856 }
 0x2ca   :  { %1242 = vmatprep.mubr.f32.mxu0 %v1719_v3 }
 0x39c   :  { %v836_v7 = vpop.f32.mrb[4].mxu0 }
 0x39d   :  { %v850_v8 = vmul.f32 %v848_v6, %v836_v7  ;;  %v838_v9 = vpop.f32.mrb[5].mxu0 }
 0x39e   :  { %v851_v11 = vmul.f32 %v848_v6, %v838_v9 }
 0x39f   :  { %v859_v12 = vadd.f32 %v857_v10, %v850_v8 }
 0x3a0   :  { %v860_v13 = vadd.f32 %v857_v10, %v851_v11 }
 0x3a1   :  { %v861_v14 = vmax.f32 %v859_v12, 0.0 }
 0x3a2   :  { %v862_v15 = vmax.f32 %v860_v13, 0.0 }
 0x3a3   :  { %874 = vrot.lane.b32.xlu0 %v861_v14, %s1723_s30 }
 0x3a4   :  { %876 = vrot.lane.b32.xlu1 %v862_v15, %s1723_s30  ;;  %s1725_s30 = smov 16  }
 0x3a7   :  { %863 = vrot.lane.b32.xlu0 %v861_v14, %s1724_s19 }
 0x3a8   :  { %865 = vrot.lane.b32.xlu1 %v862_v15, %s1724_s19 }
 0x3ab   :  { %1132 = vperm.xlu0 %1685, %v1638_v16  }
 0x3ac   :  { %1141 = vperm.xlu1 %1686, %v1639_v17  }
 0x415   :  { %v875_v19 = vpop.permute.xlu0 %874 }
 0x416   :  { %v877_v21 = vpop.permute.xlu1 %876 }
 0x417   :  { %v878_v22 = vsel %vm582_vm9, %v875_v19, %v877_v21  ;;  %v879_v23 = vsel %vm582_vm9, %v877_v21, %v875_v19 }
 0x418   :  { %v880_v24 = vsel %vm287_vm10, %v879_v23, 0.0  ;;  %v881_v25 = vsel %vm288_vm11, %v878_v22, 0.0 }
 0x419   :  { %v864_v27 = vpop.permute.xlu0 %863  ;;  %1628 = vmatprep.subr.msk.mxu1 %vm318_vm4, %v881_v25 }
 0x41a   :  { %1629 = vmatpush1.msk.msra.mxu1 %vm318_vm4, %v880_v24  ;;  %v866_v28 = vpop.permute.xlu1 %865 }
 0x41b   :  { %v868_v29 = vsel %vm867_vm12, %v864_v27, %v866_v28  ;;  %v869_v30 = vsel %vm867_vm12, %v866_v28, %v864_v27  ;;  %1630 = vmatmul.mubr.msk.f32.vlgmr.msra.gmra.mrb[4].mxu1 %vm314_vm6, %v1627_v26 }
 0x41c   :  { %v870_v31 = vsel %vm289_vm13, %v869_v30, 0.0  ;;  %v871_v32 = vsel %vm290_vm14, %v868_v29, 0.0  ;;  %1037 = vmatprep.mubr.f32.mxu1 %v1719_v3 }
 0x41d   :  { %1631 = vmatprep.subr.msk.mxu1 %vm318_vm4, %v871_v32  ;;  %v1448_v32 = vld [vmem:[%s2086_s10 + $0x8] sm:$0xff] }
 0x41e   :  { %1632 = vmatpush1.msk.msra.mxu1 %vm318_vm4, %v870_v31  ;;  %v1447_v31 = vld [vmem:[%s2086_s10] sm:$0xff]  ;;  %s1726_s10 = smov [#allocation2]  }
 0x41f   :  { %1635 = vmatprep.subr.msk.mxu1 %vm318_vm4, %v862_v15  ;;  %s1587_s15 = sshll.u32 %s1726_s10, 4  ;;  %s1588_s15 = int_to_ptr.vmem [resolvable:$true] %s1587_s15 }
 0x420   :  { %s1695_s0 = scalar_lea.vmem %s1588_s15, 512  ;;  %p1700_p1 = scmp.lt.s32.totalorder %s1588_s15, %s1588_s15 }
 0x421   :  { %p1696_p0 = scmp.ne.s32.totalorder %s1588_s15, %s1695_s0  ;;  %p1701_p2 = scmp.lt.s32.totalorder %s1695_s0, %s1695_s0 }
 0x423   :  { %1633 = vmatmul.mubr.msk.f32.vlgmr.msra.gmra.mrb[4].mxu1 %vm314_vm6, %v1626_v33  ;;  %p1702_p3 = por %p1701_p2, %p1700_p1 }
 0x424   :  { %1636 = vmatpush1.msk.msra.mxu1 %vm318_vm4, %v861_v14  ;;  %1119 = vmatprep.mubr.f32.mxu1 %v1719_v3 }
 0x425   :  { %p1703_p4 = pnand %p1702_p3, %p1696_p0 }
 0x42a   :  { %v1133_v35 = vpop.permute.xlu0 %1132 }
 0x42b   :  { %1637 = vmatmul.mubr.msk.f32.vlgmr.msra.gmra.mrb[4].mxu1 %vm314_vm6, %v1634_v34  ;;  %v1142_v39 = vpop.permute.xlu1 %1141 }
 0x42c   :  { %1525 = vmatprep.mubr.f32.mxu1 %v1719_v3 }
 0x4fe   :  { %v1121_v36 = vpop.f32.mrb[4].mxu1 }
 0x4ff   :  { %v1135_v37 = vmul.f32 %v1133_v35, %v1121_v36  ;;  %v1123_v38 = vpop.f32.mrb[5].mxu1 }
 0x500   :  { %v1136_v40 = vmul.f32 %v1133_v35, %v1123_v38 }
 0x501   :  { %v1144_v41 = vadd.f32 %v1142_v39, %v1135_v37 }
 0x502   :  { %v1145_v42 = vadd.f32 %v1142_v39, %v1136_v40 }
 0x503   :  { %v1146_v43 = vmax.f32 %v1144_v41, 0.0 }
 0x504   :  { %v1147_v44 = vmax.f32 %v1145_v42, 0.0 }
 0x505   :  { %1159 = vrot.lane.b32.xlu0 %v1146_v43, %s1724_s19 }
 0x506   :  { %1161 = vrot.lane.b32.xlu1 %v1147_v44, %s1724_s19 }
 0x509   :  { %1148 = vrot.lane.b32.xlu0 %v1146_v43, %s1725_s30 }
 0x50a   :  { %1150 = vrot.lane.b32.xlu1 %v1147_v44, %s1725_s30 }
 0x50d   :  { %1417 = vperm.xlu0 %1685, %v1652_v45  }
 0x50e   :  { %1426 = vperm.xlu1 %1686, %v1653_v46  }
 0x511   :  { %137 = vperm.xlu0 %1685, %v133_v47  }
 0x512   :  { %142 = vperm.xlu1 %1686, %v134_v48  }
 0x515   :  { %1542 = vperm.xlu0 %1685, %v1538_v49  }
 0x516   :  { %1547 = vperm.xlu1 %1686, %v1539_v52  }
 0x519   :  { %153 = vperm.xlu0 %1685, %v149_v53  }
 0x51a   :  { %158 = vperm.xlu1 %1686, %v150_v54  }
 0x51d   :  { %1558 = vperm.xlu0 %1685, %v1554_v55  }
 0x51e   :  { %1563 = vperm.xlu1 %1686, %v1555_v56  }
 0x577   :  { %v1160_v57 = vpop.permute.xlu0 %1159 }
 0x578   :  { %v1162_v58 = vpop.permute.xlu1 %1161 }
 0x579   :  { %v1163_v59 = vsel %vm867_vm12, %v1160_v57, %v1162_v58  ;;  %v1164_v60 = vsel %vm867_vm12, %v1162_v58, %v1160_v57 }
 0x57a   :  { %v1165_v61 = vsel %vm289_vm13, %v1164_v60, 0.0  ;;  %v1166_v62 = vsel %vm290_vm14, %v1163_v59, 0.0 }
 0x57b   :  { %1642 = vmatprep.subr.msk.mxu0 %vm318_vm4, %v1166_v62  ;;  %v1149_v0 = vpop.permute.xlu0 %1148 }
 0x57c   :  { %v1151_v1 = vpop.permute.xlu1 %1150  ;;  %1643 = vmatpush1.msk.msra.mxu0 %vm318_vm4, %v1165_v61 }
 0x57d   :  { %v1153_v2 = vsel %vm1152_vm15, %v1149_v0, %v1151_v1  ;;  %v1154_v6 = vsel %vm1152_vm15, %v1151_v1, %v1149_v0  ;;  %1644 = vmatmul.mubr.msk.f32.vlgmr.msra.gmra.mrb[6].mxu0 %vm314_vm6, %v1641_v63 }
 0x57e   :  { %v1155_v7 = vsel %vm291_vm0, %v1154_v6, 0.0  ;;  %v1156_v8 = vsel %vm292_vm1, %v1153_v2, 0.0  ;;  %1322 = vmatprep.mubr.f32.mxu0 %v1719_v3 }
 0x57f   :  { %1645 = vmatprep.subr.msk.mxu0 %vm318_vm4, %v1156_v8 }
 0x580   :  { %1646 = vmatpush1.msk.msra.mxu0 %vm318_vm4, %v1155_v7 }
 0x581   :  { %1649 = vmatprep.subr.msk.mxu0 %vm318_vm4, %v1147_v44 }
 0x585   :  { %1647 = vmatmul.mubr.msk.f32.vlgmr.msra.gmra.mrb[6].mxu0 %vm314_vm6, %v1640_v18 }
 0x586   :  { %1650 = vmatpush1.msk.msra.mxu0 %vm318_vm4, %v1146_v43  ;;  %1404 = vmatprep.mubr.f32.mxu0 %v1719_v3 }
 0x58c   :  { %v1418_v9 = vpop.permute.xlu0 %1417 }
 0x58d   :  { %1651 = vmatmul.mubr.msk.f32.vlgmr.msra.gmra.mrb[6].mxu0 %vm314_vm6, %v1648_v20  ;;  %v1427_v13 = vpop.permute.xlu1 %1426 }
 0x590   :  { %v138_v33 = vpop.permute.xlu0 %137 }
 0x591   :  { %v143_v34 = vpop.permute.xlu1 %142  ;;  %v145_v40 = vmul.f32 %v138_v33, %v1885_v50  ;;  %v146_v43 = vmul.f32 %v138_v33, %v1887_v51 }
 0x592   :  { %v147_v52 = vmul.f32 %v143_v34, %v1929_v4  ;;  %v148_v56 = vmul.f32 %v143_v34, %v1931_v5 }
 0x594   :  { %v1543_v35 = vpop.permute.xlu0 %1542 }
 0x595   :  { %v1548_v36 = vpop.permute.xlu1 %1547 }
 0x598   :  { %v154_v37 = vpop.permute.xlu0 %153 }
 0x599   :  { %v159_v38 = vpop.permute.xlu1 %158  ;;  %v161_v45 = vadd.f32 %v154_v37, %v145_v40  ;;  %v162_v47 = vadd.f32 %v154_v37, %v146_v43 }
 0x59a   :  { %v163_v59 = vadd.f32 %v159_v38, %v147_v52  ;;  %v164_v61 = vadd.f32 %v159_v38, %v148_v56 }
 0x59d   :  { %v1564_v57 = vpop.permute.xlu1 %1563 }
 0x660   :  { %v1406_v10 = vpop.f32.mrb[6].mxu0 }
 0x661   :  { %v1420_v11 = vmul.f32 %v1418_v9, %v1406_v10  ;;  %v1408_v12 = vpop.f32.mrb[7].mxu0 }
 0x662   :  { %v1421_v14 = vmul.f32 %v1418_v9, %v1408_v12 }
 0x663   :  { %v1429_v15 = vadd.f32 %v1427_v13, %v1420_v11 }
 0x664   :  { %v1430_v16 = vadd.f32 %v1427_v13, %v1421_v14 }
 0x665   :  { %v1431_v17 = vmax.f32 %v1429_v15, 0.0 }
 0x666   :  { %v1432_v19 = vmax.f32 %v1430_v16, 0.0 }
 0x667   :  { %v1654_v21 = vmul.f32 -1.442695, %v1431_v17 }
 0x668   :  { %v1655_v22 = vmul.f32 -1.442695, %v1432_v19 }
 0x669   :  { %1687 = vpow2.f32 %v1654_v21 }
 0x66a   :  { %1689 = vpow2.f32 %v1655_v22 }
 0x673   :  { %v1688_v23 = vpop.eup %1687 }
 0x674   :  { %v1690_v24 = vpop.eup %1689  ;;  %v1439_v25 = vadd.f32 1.0, %v1688_v23 }
 0x675   :  { %v1440_v26 = vadd.f32 1.0, %v1690_v24 }
 0x676   :  { %1691 = vrcp.f32 %v1439_v25 }
 0x677   :  { %1693 = vrcp.f32 %v1440_v26 }
 0x680   :  { %v1692_v27 = vpop.eup %1691 }
 0x681   :  { %v1694_v28 = vpop.eup %1693  ;;  %v1445_v30 = vmul.f32 %v1692_v27, %v1431_v17 }
 0x682   :  { %v1446_v29 = vmul.f32 %v1694_v28, %v1432_v19 }
 0x684   :  { %1656 = vmatprep.subr.msk.mxu1 %vm318_vm4, %v1446_v29 }
 0x685   :  { %1657 = vmatpush1.msk.msra.mxu1 %vm318_vm4, %v1445_v30 }
 0x686   :  { %1658 = vmatmul.mubr.msk.f32.vlgmr.msra.gmra.mrb[6].mxu1 %vm314_vm6, %v1447_v31 }
 0x687   :  { %1531 = vmatprep.mubr.f32.mxu1 %v1719_v3  ;;  %v1559_v3 = vpop.permute.xlu0 %1558 }
 0x68a   :  { %1659 = vmatmul.mubr.msk.f32.gmra.mrb[8].mxu1 %vm314_vm6, %v1448_v32 }
 0x759   :  { %v1527_v39 = vpop.f32.mrb[6].mxu1 }
 0x75a   :  { %v1550_v41 = vmul.f32 %v1543_v35, %v1527_v39  ;;  %v1529_v42 = vpop.f32.mrb[7].mxu1 }
 0x75b   :  { %v1551_v44 = vmul.f32 %v1543_v35, %v1529_v42 }
 0x75c   :  { %v1566_v46 = vadd.f32 %v1559_v3, %v1550_v41 }
 0x75d   :  { %v1567_v48 = vadd.f32 %v1559_v3, %v1551_v44  ;;  %v1533_v49 = vpop.f32.mrb[8].mxu1 }
 0x75e   :  { %v1570_v53 = vadd.f32 %v1566_v46, %v161_v45  ;;  %v1552_v54 = vmul.f32 %v1548_v36, %v1533_v49  ;;  %v1535_v55 = vpop.f32.mrb[9].mxu1 }
 0x75f   :  { %v1571_v50 = vadd.f32 %v1567_v48, %v162_v47  ;;  %v1553_v58 = vmul.f32 %v1548_v36, %v1535_v55 }
 0x760   :  { %v1574_v60 = vmax.f32 %v1570_v53, 0.0  ;;  %v1568_v51 = vadd.f32 %v1564_v57, %v1552_v54 }
 0x761   :  { %v1575_v62 = vmax.f32 %v1571_v50, 0.0  ;;  %v1569_v63 = vadd.f32 %v1564_v57, %v1553_v58 }
 0x762   :  { %1578 = vst [vmem:[#allocation2] sm:$0xff] %v1574_v60  ;;  %v1572_v0 = vadd.f32 %v1568_v51, %v163_v59 }
 0x763   :  { %1579 = vst [vmem:[#allocation2 + $0x8] sm:$0xff] %v1575_v62  ;;  %v1573_v4 = vadd.f32 %v1569_v63, %v164_v61 }
 0x764   :  { %v1576_v1 = vmax.f32 %v1572_v0, 0.0 }
 0x765   :  { %v1577_v2 = vmax.f32 %v1573_v4, 0.0 }
 0x766   :  { %1580 = vst [vmem:[#allocation2 + $0x10] sm:$0xff] %v1576_v1 }
 0x767   :  { %1581 = vst [vmem:[#allocation2 + $0x18] sm:$0xff] %v1577_v2 }
 0x768   :  { %1706 = shalt.err (!%p1703_p4)
}
 0x769   :  { %s1707_s5 = scalar_lea.hbm %s2089_s13, 512 }
 0x76a   :  { %p1708_p5 = scmp.ne.s32.totalorder %s2089_s13, %s1707_s5  ;;  %p1711_p6 = scmp.lt.u32.totalorder %s1707_s5, %s2089_s13 }
 0x76c   :  { %p1713_p7 = pnand %p1711_p6, %p1708_p5 }
 0x76e   :  { %1716 = shalt.err (!%p1713_p7)
}
 0x76f   :  { %s1727_s19 = smov 256  }
 0x770   :  { %1593 = dma.vmem_to_hbm [thread:$0]  %s1588_s15, 512, %s2089_s13, [#allocation3], %s1727_s19, %s1727_s19, %s1725_s30  }
 0x771   :  { %1717 = dma.done.wait [#allocation3], 512  }
 0x772   :  { %1718 = vsyncadd [#allocation3], 4294966784 }
 0x773   :  { %1597 = vsyncpa [#allocation3], 1 }

</bundles_post_ra>
